<compile_context>
chip_gen: v7x
topology: tpu7x:2x2x1
jax: 0.10.0
libtpu: 0.0.40
codegen_flags: <defaults>
</compile_context>

<pallas_src>
import jax
import jax.numpy as jnp
from jax.experimental import pallas as pl
from jax.experimental.pallas import tpu as pltpu

STATE_SIZE = 11
ACTION_SIZE = 3
H1 = 64
H2 = 32
DEFAULT_TILE_B = 16384  # batch tile; sweep 8192-32768 (cap ~16K-32K on v7x)


def _round_up(n, m):
    return ((n + m - 1) // m) * m


def dqn_kernel(x_ref, w1_ref, b1_ref, w2_ref, b2_ref, w3_ref, b3_ref, o_ref):
    # x_ref: (STATE_SIZE, TILE_B) bf16. Weights are PyTorch (out, in) layout, bf16,
    # VMEM-resident across the whole grid. b1/b2 are bf16 (out, 1) columns, b3 is a
    # f32 (ACTION_SIZE, 1) column. MXU accumulates in f32; the VPU epilogue
    # (bias + ReLU) and the h1/h2 intermediates stay bf16 to halve VMEM/vreg use.
    x = x_ref[...]                                                        # (11, TB) bf16

    # Layer 1: Linear(11, 64) + ReLU
    h1 = jnp.dot(w1_ref[...], x, preferred_element_type=jnp.float32)     # (64, TB) f32
    h1 = jnp.maximum(h1.astype(jnp.bfloat16) + b1_ref[...], 0)           # (64, TB) bf16

    # Layer 2: Linear(64, 32) + ReLU
    h2 = jnp.dot(w2_ref[...], h1, preferred_element_type=jnp.float32)    # (32, TB) f32
    h2 = jnp.maximum(h2.astype(jnp.bfloat16) + b2_ref[...], 0)           # (32, TB) bf16

    # Layer 3: Linear(32, 3)  (Q-values, no activation) -> lane-dense f32 store
    q = jnp.dot(w3_ref[...], h2, preferred_element_type=jnp.float32)     # (3, TB) f32
    o_ref[...] = (q + b3_ref[...]).astype(o_ref.dtype)


def dqn_forward_t(x_t, kparams, *, tile_b=DEFAULT_TILE_B, core_parallel=False):
    """Fast path. x_t: (STATE_SIZE, B) -> Q-values (ACTION_SIZE, B) f32.

    x_t is streamed as bf16 (cast here if needed); producers should ideally emit
    bf16 feature-major states directly so the cast fuses away.
    """
    w1, b1, w2, b2, w3, b3 = kparams
    s, batch = x_t.shape
    assert s == STATE_SIZE

    if x_t.dtype != jnp.bfloat16:
        x_t = x_t.astype(jnp.bfloat16)

    # Pad batch only to the 128-lane multiple; ragged tiles are masked by Pallas.
    padded = _round_up(max(batch, 1), 128)
    if padded != batch:
        x_t = jnp.pad(x_t, ((0, 0), (0, padded - batch)))
    tile_b = min(_round_up(tile_b, 128), padded)
    grid = (pl.cdiv(padded, tile_b),)

    # Constant index_map -> parameter blocks stay resident in VMEM across steps.
    # TODO(synk): pack the six tiny weight/bias arrays into one lane-aligned buffer
    # to cut DMA descriptor count (small win at small / latency-bound batch).
    resident = lambda shape: pl.BlockSpec(shape, lambda i, _s=shape: (0,) * len(_s))

    flops = 2 * padded * (STATE_SIZE * H1 + H1 * H2 + H2 * ACTION_SIZE)
    bytes_accessed = (
        padded * STATE_SIZE * 2                          # dominant: bf16 x stream
        + padded * ACTION_SIZE * 4                       # f32 Q-value output
        + sum(int(a.size) * a.dtype.itemsize for a in kparams)
    )

    dim_sem = (pltpu.CORE_PARALLEL,) if core_parallel else ("parallel",)

    out = pl.pallas_call(
        dqn_kernel,
        out_shape=jax.ShapeDtypeStruct((ACTION_SIZE, padded), jnp.float32),
        grid=grid,
        in_specs=[
            # Batch-tiled, double-buffered x stream (lane dim = batch). Default
            # double buffering is enough: the kernel is DMA-bound, deeper buffering
            # only burns VMEM.
            pl.BlockSpec((STATE_SIZE, tile_b), lambda i: (0, i)),
            resident(w1.shape), resident(b1.shape),
            resident(w2.shape), resident(b2.shape),
            resident(w3.shape), resident(b3.shape),
        ],
        out_specs=pl.BlockSpec((ACTION_SIZE, tile_b), lambda i: (0, i)),
        compiler_params=pltpu.CompilerParams(
            dimension_semantics=dim_sem,
            vmem_limit_bytes=32 * 1024 * 1024,
        ),
        cost_estimate=pl.CostEstimate(
            flops=flops, transcendentals=0, bytes_accessed=bytes_accessed),
    )(x_t, w1, b1, w2, b2, w3, b3)
    return out[:, :batch]


def dqn_forward(x, kparams, *, tile_b=DEFAULT_TILE_B, core_parallel=False):
    """PyTorch-compatible interface: x (B, STATE_SIZE) -> (B, ACTION_SIZE).

    WARNING (perf): the two transposes here are each a full extra HBM pass over the
    dominant stream. Keep the pipeline feature-major and call dqn_forward_t directly
    in production.
    """
    q_t = dqn_forward_t(x.T, kparams, tile_b=tile_b, core_parallel=core_parallel)
    return q_t.T


def init_params(key):
    """PyTorch nn.Linear-style params: W (out, in), b (out,), f32,
    uniform(-1/sqrt(fan_in), +1/sqrt(fan_in))."""
    ks = jax.random.split(key, 6)

    def lin(kw, kb, fan_in, fan_out):
        bound = 1.0 / jnp.sqrt(jnp.float32(fan_in))
        w = jax.random.uniform(kw, (fan_out, fan_in), jnp.float32, -bound, bound)
        b = jax.random.uniform(kb, (fan_out,), jnp.float32, -bound, bound)
        return w, b

    w1, b1 = lin(ks[0], ks[1], STATE_SIZE, H1)
    w2, b2 = lin(ks[2], ks[3], H1, H2)
    w3, b3 = lin(ks[4], ks[5], H2, ACTION_SIZE)
    return (w1, b1, w2, b2, w3, b3)


def prepare_params(params):
    """Kernel-side layout: bf16 weights (MXU operands), bf16 (out, 1) bias columns
    for the hidden layers (bf16 epilogue), f32 column for the output bias."""
    w1, b1, w2, b2, w3, b3 = params
    col = lambda b, dt: b.reshape(-1, 1).astype(dt)
    return (w1.astype(jnp.bfloat16), col(b1, jnp.bfloat16),
            w2.astype(jnp.bfloat16), col(b2, jnp.bfloat16),
            w3.astype(jnp.bfloat16), col(b3, jnp.float32))


def dqn_reference(x, params):
    """Pure-f32 reference matching the PyTorch module."""
    w1, b1, w2, b2, w3, b3 = params
    h1 = jnp.maximum(x @ w1.T + b1, 0.0)
    h2 = jnp.maximum(h1 @ w2.T + b2, 0.0)
    return h2 @ w3.T + b3


def dqn_reference_bf16(x, params):
    """Reference mirroring the kernel's numerics: bf16 operands, f32 MXU accumulate,
    bf16 epilogue on the hidden layers, f32 output bias add."""
    w1, b1, w2, b2, w3, b3 = params
    bf = lambda a: a.astype(jnp.bfloat16)
    h1 = jnp.dot(bf(x), bf(w1).T, preferred_element_type=jnp.float32)
    h1 = jnp.maximum(h1.astype(jnp.bfloat16) + bf(b1), 0)
    h2 = jnp.dot(h1, bf(w2).T, preferred_element_type=jnp.float32)
    h2 = jnp.maximum(h2.astype(jnp.bfloat16) + bf(b2), 0)
    return jnp.dot(h2, bf(w3).T, preferred_element_type=jnp.float32) + b3


if __name__ == "__main__":
    key = jax.random.PRNGKey(0)
    kp, kx = jax.random.split(key)
    params = init_params(kp)
    kparams = prepare_params(params)

    batch = 8
    x = jax.random.normal(kx, (batch, STATE_SIZE), jnp.float32)

    out = dqn_forward(x, kparams)
    out = jax.block_until_ready(out)
    assert out.shape == (batch, ACTION_SIZE)

    ref_bf16 = dqn_reference_bf16(x, params)   # same numerics as the kernel
    ref_f32 = dqn_reference(x, params)         # PyTorch f32 semantics
    assert jnp.allclose(out, ref_bf16, atol=2e-2, rtol=2e-2), "mismatch vs bf16 reference"
    assert jnp.allclose(out, ref_f32, atol=1e-1, rtol=1e-1), "mismatch vs f32 reference"

    print("KERNEL_OK")
</pallas_src>

<mosaic_0001>
module attributes {stable_mosaic.version = 11 : i64} {
  func.func @dqn_kernel(%arg0: i32, %arg1: memref<11x128xbf16, #tpu.memory_space<vmem>>, %arg2: memref<64x11xbf16, #tpu.memory_space<vmem>>, %arg3: memref<64x1xbf16, #tpu.memory_space<vmem>>, %arg4: memref<32x64xbf16, #tpu.memory_space<vmem>>, %arg5: memref<32x1xbf16, #tpu.memory_space<vmem>>, %arg6: memref<3x32xbf16, #tpu.memory_space<vmem>>, %arg7: memref<3x1xf32, #tpu.memory_space<vmem>>, %arg8: memref<3x128xf32, #tpu.memory_space<vmem>>) attributes {dimension_semantics = [#tpu.dimension_semantics<parallel>], iteration_bounds = array<i64: 1>, scalar_prefetch = 0 : i64, scratch_operands = 0 : i64, tpu.core_type = #tpu.core_type<tc>, window_params = [{transform_indices = @transform_0, window_bounds = array<i64: 11, 128>}, {pipeline_mode = #tpu.pipeline_mode<synchronous>, transform_indices = @transform_1, window_bounds = array<i64: 64, 11>}, {pipeline_mode = #tpu.pipeline_mode<synchronous>, transform_indices = @transform_2, window_bounds = array<i64: 64, 1>}, {pipeline_mode = #tpu.pipeline_mode<synchronous>, transform_indices = @transform_3, window_bounds = array<i64: 32, 64>}, {pipeline_mode = #tpu.pipeline_mode<synchronous>, transform_indices = @transform_4, window_bounds = array<i64: 32, 1>}, {pipeline_mode = #tpu.pipeline_mode<synchronous>, transform_indices = @transform_5, window_bounds = array<i64: 3, 32>}, {pipeline_mode = #tpu.pipeline_mode<synchronous>, transform_indices = @transform_6, window_bounds = array<i64: 3, 1>}, {transform_indices = @transform_7, window_bounds = array<i64: 3, 128>}]} {
    %c0 = arith.constant 0 : index
    %c0_0 = arith.constant 0 : index
    %0 = vector.load %arg1[%c0, %c0_0] : memref<11x128xbf16, #tpu.memory_space<vmem>>, vector<11x128xbf16>
    %c0_1 = arith.constant 0 : index
    %c0_2 = arith.constant 0 : index
    %1 = vector.load %arg2[%c0_1, %c0_2] : memref<64x11xbf16, #tpu.memory_space<vmem>>, vector<64x11xbf16>
    %cst = arith.constant dense<0.000000e+00> : vector<64x128xf32>
    %2 = tpu.matmul %1, %0, %cst {dimension_numbers = #tpu.dot_dimension_numbers<[1], [0], [0], [1], [0, 0, 1, 1], [], []>} : vector<64x11xbf16>, vector<11x128xbf16>, vector<64x128xf32> -> vector<64x128xf32>
    %3 = arith.truncf %2 : vector<64x128xf32> to vector<64x128xbf16>
    %c0_3 = arith.constant 0 : index
    %c0_4 = arith.constant 0 : index
    %4 = vector.load %arg3[%c0_3, %c0_4] : memref<64x1xbf16, #tpu.memory_space<vmem>>, vector<64x1xbf16>
    %5 = vector.broadcast %4 : vector<64x1xbf16> to vector<64x128xbf16>
    %6 = arith.addf %3, %5 : vector<64x128xbf16>
    %cst_5 = arith.constant 0.000000e+00 : bf16
    %7 = vector.broadcast %cst_5 : bf16 to vector<64x128xbf16>
    %8 = arith.maximumf %6, %7 : vector<64x128xbf16>
    %c0_6 = arith.constant 0 : index
    %c0_7 = arith.constant 0 : index
    %9 = vector.load %arg4[%c0_6, %c0_7] : memref<32x64xbf16, #tpu.memory_space<vmem>>, vector<32x64xbf16>
    %cst_8 = arith.constant dense<0.000000e+00> : vector<32x128xf32>
    %10 = tpu.matmul %9, %8, %cst_8 {dimension_numbers = #tpu.dot_dimension_numbers<[1], [0], [0], [1], [0, 0, 1, 1], [], []>} : vector<32x64xbf16>, vector<64x128xbf16>, vector<32x128xf32> -> vector<32x128xf32>
    %11 = arith.truncf %10 : vector<32x128xf32> to vector<32x128xbf16>
    %c0_9 = arith.constant 0 : index
    %c0_10 = arith.constant 0 : index
    %12 = vector.load %arg5[%c0_9, %c0_10] : memref<32x1xbf16, #tpu.memory_space<vmem>>, vector<32x1xbf16>
    %13 = vector.broadcast %12 : vector<32x1xbf16> to vector<32x128xbf16>
    %14 = arith.addf %11, %13 : vector<32x128xbf16>
    %cst_11 = arith.constant 0.000000e+00 : bf16
    %15 = vector.broadcast %cst_11 : bf16 to vector<32x128xbf16>
    %16 = arith.maximumf %14, %15 : vector<32x128xbf16>
    %c0_12 = arith.constant 0 : index
    %c0_13 = arith.constant 0 : index
    %17 = vector.load %arg6[%c0_12, %c0_13] : memref<3x32xbf16, #tpu.memory_space<vmem>>, vector<3x32xbf16>
    %cst_14 = arith.constant dense<0.000000e+00> : vector<3x128xf32>
    %18 = tpu.matmul %17, %16, %cst_14 {dimension_numbers = #tpu.dot_dimension_numbers<[1], [0], [0], [1], [0, 0, 1, 1], [], []>} : vector<3x32xbf16>, vector<32x128xbf16>, vector<3x128xf32> -> vector<3x128xf32>
    %c0_15 = arith.constant 0 : index
    %c0_16 = arith.constant 0 : index
    %19 = vector.load %arg7[%c0_15, %c0_16] : memref<3x1xf32, #tpu.memory_space<vmem>>, vector<3x1xf32>
    %20 = vector.broadcast %19 : vector<3x1xf32> to vector<3x128xf32>
    %21 = arith.addf %18, %20 : vector<3x128xf32>
    %c0_17 = arith.constant 0 : index
    %c0_18 = arith.constant 0 : index
    %22 = vector.load %arg8[%c0_17, %c0_18] : memref<3x128xf32, #tpu.memory_space<vmem>>, vector<3x128xf32>
    tpu.vector_store %arg8[%c0_17, %c0_18], %21 {strides = array<i32>} : memref<3x128xf32, #tpu.memory_space<vmem>>, vector<3x128xf32>,
    return
  }
  func.func @transform_0(%arg0: i32) -> (i32, i32) {
    %c0_i32 = arith.constant 0 : i32
    %c0_i32_0 = arith.constant 0 : i32
    return %c0_i32, %arg0 : i32, i32
  }
  func.func @transform_1(%arg0: i32) -> (i32, i32) {
    %c0_i32 = arith.constant 0 : i32
    %c0_i32_0 = arith.constant 0 : i32
    %c0_i32_1 = arith.constant 0 : i32
    return %c0_i32, %c0_i32_0 : i32, i32
  }
  func.func @transform_2(%arg0: i32) -> (i32, i32) {
    %c0_i32 = arith.constant 0 : i32
    %c0_i32_0 = arith.constant 0 : i32
    %c0_i32_1 = arith.constant 0 : i32
    return %c0_i32, %c0_i32_0 : i32, i32
  }
  func.func @transform_3(%arg0: i32) -> (i32, i32) {
    %c0_i32 = arith.constant 0 : i32
    %c0_i32_0 = arith.constant 0 : i32
    %c0_i32_1 = arith.constant 0 : i32
    return %c0_i32, %c0_i32_0 : i32, i32
  }
  func.func @transform_4(%arg0: i32) -> (i32, i32) {
    %c0_i32 = arith.constant 0 : i32
    %c0_i32_0 = arith.constant 0 : i32
    %c0_i32_1 = arith.constant 0 : i32
    return %c0_i32, %c0_i32_0 : i32, i32
  }
  func.func @transform_5(%arg0: i32) -> (i32, i32) {
    %c0_i32 = arith.constant 0 : i32
    %c0_i32_0 = arith.constant 0 : i32
    %c0_i32_1 = arith.constant 0 : i32
    return %c0_i32, %c0_i32_0 : i32, i32
  }
  func.func @transform_6(%arg0: i32) -> (i32, i32) {
    %c0_i32 = arith.constant 0 : i32
    %c0_i32_0 = arith.constant 0 : i32
    %c0_i32_1 = arith.constant 0 : i32
    return %c0_i32, %c0_i32_0 : i32, i32
  }
  func.func @transform_7(%arg0: i32) -> (i32, i32) {
    %c0_i32 = arith.constant 0 : i32
    %c0_i32_0 = arith.constant 0 : i32
    return %c0_i32, %arg0 : i32, i32
  }
}

</mosaic_0001>

<bundles_post_ra>
// kernel: tpu_custom_call.1
= control target key start
LH: loop header
LB: loop body
LE: loop exit
PB: predicated region body
PF: predicated region fallthrough
CT: control target
= control target key end

     0   :  { %vm76_vm0 = vcmask 1044480   ;;  %vm77_vm1 = vcmask 1045504   ;;  %v597_v2 = vmov 65535   ;;  %vm63_vm2 = vcmask 89088   ;;  %s746_s0 = inlined_call_operand.vmem [shape: bf16[11,128], index: 0, kind: input, shape index: {}]   ;;  %s747_s1 = inlined_call_operand.vmem [shape: bf16[64,11], index: 1, kind: input, shape index: {}]   ;;  %s748_s2 = inlined_call_operand.vmem [shape: bf16[64,1], index: 2, kind: input, shape index: {}]   ;;  %s749_s3 = inlined_call_operand.vmem [shape: bf16[32,64], index: 3, kind: input, shape index: {}]   ;;  %s750_s4 = inlined_call_operand.vmem [shape: bf16[32,1], index: 4, kind: input, shape index: {}]   ;;  %s751_s5 = inlined_call_operand.vmem [shape: bf16[3,32], index: 5, kind: input, shape index: {}]   ;;  %s752_s6 = inlined_call_operand.vmem [shape: f32[3,1], index: 6, kind: input, shape index: {}]   ;;  %s753_s7 = inlined_call_operand.hbm [shape: f32[3,128], index: 7, kind: output, shape index: {}]  }
   0x1   :  { %v566_v0 = vld [vmem:[%s746_s0] sm:$0x3f]   ;;  %v78_v3 = vsel %vm76_vm0, 4294967295, %v597_v2  ;;  %v598_v6 = vmov 0   ;;  %v568_v8 = vld [vmem:[%s747_s1 + $0x8] sm:$0xff]   ;;  %v569_v10 = vld [vmem:[%s747_s1 + $0x10] sm:$0xff]  }
   0x2   :  { %v567_v1 = vld [vmem:[%s747_s1] sm:$0xff]   ;;  %v79_v4 = vsel %vm77_vm1, %v78_v3, 0  ;;  %564 = vset.pattern.permute.xlu0 %v598_v6  ;;  %565 = vset.pattern.permute.xlu1 %v598_v6  ;;  %v154_v9 = vld [vmem:[%s748_s2 + $0x8] sm:$0xf]  ;;  %v155_v12 = vld [vmem:[%s748_s2 + $0xc] sm:$0xf] }
   0x3   :  { %530 = vmatprep.mubr.msk.bf16.mxu0 %vm63_vm2, %v567_v1  ;;  %v81_v5 = vand.u32 %v566_v0, %v79_v4  ;;  %v152_v7 = vld [vmem:[%s748_s2] sm:$0xf]  ;;  %186 = vperm.xlu1 %565, %v154_v9   ;;  %v153_v11 = vld [vmem:[%s748_s2 + $0x4] sm:$0xf]  ;;  %v156_v13 = vld [vmem:[%s748_s2 + $0x10] sm:$0xf] }
   0x4   :  { %162 = vperm.xlu0 %564, %v152_v7  }
   0x5   :  { %528 = vmatprep.subr.bf16.mxu0 %v81_v5 }
   0x6   :  { %529 = vmatpush3.bf16.msra.mxu0 %v81_v5 }
   0x7   :  { %198 = vperm.xlu1 %565, %v155_v12  }
   0x8   :  { %174 = vperm.xlu0 %564, %v153_v11  }
   0x9   :  { %531 = vmatmul.mubr.msk.bf16.vlgmr.msra.gmra.mrb[0].mxu0 %vm63_vm2, %v568_v8 }
   0xa   :  { %534 = vmatprep.mubr.msk.bf16.mxu0 %vm63_vm2, %v569_v10 }
   0xb   :  { %12 = vsyncpa [#allocation3], 0  ;;  %v157_v14 = vld [vmem:[%s748_s2 + $0x14] sm:$0xf]  ;;  %v570_v15 = vld [vmem:[%s747_s1 + $0x18] sm:$0xff]   ;;  %vm302_vm3 = vcmask 523264   ;;  %v168_v26 = vlaneseq }
   0xc   :  { %210 = vperm.xlu0 %564, %v156_v13   ;;  %222 = vperm.xlu1 %565, %v157_v14   ;;  %v158_v16 = vld [vmem:[%s748_s2 + $0x18] sm:$0xf]  ;;  %v159_v17 = vld [vmem:[%s748_s2 + $0x1c] sm:$0xf]  ;;  %v360_v18 = vld [vmem:[%s750_s4] sm:$0xf] }
   0xd   :  { %v361_v19 = vld [vmem:[%s750_s4 + $0x4] sm:$0xf]  ;;  %v362_v20 = vld [vmem:[%s750_s4 + $0x8] sm:$0xf]  ;;  %v363_v21 = vld [vmem:[%s750_s4 + $0xc] sm:$0xf] }
   0xe   :  { %v429_v22 = vld [vmem:[%s752_s6] sm:$0x7]  ;;  %v599_v24 = vmov 839922192   ;;  %v169_v30 = vshrl.u32 %v168_v26, 7  ;;  %v572_v7 = vld [vmem:[%s749_s3 + $0x8] sm:$0xff]  }
   0xf   :  { %v571_v23 = vld [vmem:[%s749_s3] sm:$0xff]   ;;  %v166_v25 = vunpack.c.l.s4 %v599_v24  ;;  %v600_v8 = vmov 0.0   ;;  %vm601_vm4 = vmmov 0   ;;  %vm435_vm5 = vcmask 261120   ;;  %s602_s13 = smov [#allocation2]  }
  0x10   :  { %234 = vperm.xlu0 %564, %v158_v16   ;;  %246 = vperm.xlu1 %565, %v159_v17   ;;  %s486_s14 = sshll.u32 %s602_s13, 4  ;;  %s487_s14 = int_to_ptr.vmem [resolvable:$true] %s486_s14 }
  0x11   :  { %535 = vmatmul.mubr.msk.bf16.gmra.mrb[4].mxu0 %vm63_vm2, %v570_v15  ;;  %546 = vmatprep.mubr.msk.bf16.mxu1 %vm302_vm3, %v571_v23  ;;  %v167_v29 = vunpack.c.0.s8 %v166_v25  ;;  %s573_s15 = scalar_lea.vmem %s487_s14, 64  ;;  %p578_p1 = scmp.lt.s32.totalorder %s487_s14, %s487_s14 }
  0x12   :  { %550 = vmatprep.subr.bf16.mxu0 %v600_v8  ;;  %554 = vmatprep.mubr.msk.bf16.mxu0 %vm601_vm4, %v600_v8  ;;  %p574_p0 = scmp.ne.s32.totalorder %s487_s14, %s573_s15  ;;  %p579_p2 = scmp.lt.s32.totalorder %s573_s15, %s573_s15 }
  0x13   :  { %v707_v33 = vsub.s32 %v167_v29, %v169_v30  ;;  %v428_v29 = vld [vmem:[%s751_s5] sm:$0x3] }
  0x14   :  { %366 = vperm.xlu0 %564, %v360_v18   ;;  %378 = vperm.xlu1 %565, %v361_v19   ;;  %p580_p3 = por %p579_p2, %p578_p1 }
  0x16   :  { %p581_p4 = pnand %p580_p3, %p574_p0 }
  0x18   :  { %390 = vperm.xlu0 %564, %v362_v20   ;;  %402 = vperm.xlu1 %565, %v363_v21  }
  0x1c   :  { %432 = vperm.xlu0 %564, %v429_v22  }
  0x82   :  { %v187_v28 = vpop.permute.xlu1 %186 }
  0x83   :  { %v163_v27 = vpop.permute.xlu0 %162  ;;  %v195_v34 = vrot.slane %v187_v28, %v707_v33 }
  0x84   :  { %v171_v36 = vrot.slane %v163_v27, %v707_v33 }
  0x86   :  { %v199_v32 = vpop.permute.xlu1 %198 }
  0x87   :  { %v175_v31 = vpop.permute.xlu0 %174  ;;  %v207_v35 = vrot.slane %v199_v32, %v707_v33 }
  0x88   :  { %v183_v37 = vrot.slane %v175_v31, %v707_v33 }
  0x89   :  { %v504_v42 = vcombine.low %v195_v34, %v207_v35 }
  0x8a   :  { %v503_v46 = vcombine.low %v171_v36, %v183_v37 }
  0x8b   :  { %v211_v38 = vpop.permute.xlu0 %210  ;;  %v223_v40 = vpop.permute.xlu1 %222 }
  0x8c   :  { %v219_v50 = vrot.slane %v211_v38, %v707_v33  ;;  %v231_v53 = vrot.slane %v223_v40, %v707_v33 }
  0x8e   :  { %v505_v63 = vcombine.low %v219_v50, %v231_v53 }
  0x8f   :  { %v235_v51 = vpop.permute.xlu0 %234  ;;  %v247_v52 = vpop.permute.xlu1 %246 }
  0x90   :  { %v243_v54 = vrot.slane %v235_v51, %v707_v33  ;;  %v255_v55 = vrot.slane %v247_v52, %v707_v33 }
  0x92   :  { %v506_v0 = vcombine.low %v243_v54, %v255_v55 }
  0x93   :  { %v379_v9 = vpop.permute.xlu1 %378  ;;  %v367_v10 = vpop.permute.xlu0 %366 }
  0x94   :  { %v375_v15 = vrot.slane %v367_v10, %v707_v33  ;;  %v387_v16 = vrot.slane %v379_v9, %v707_v33 }
  0x96   :  { %v511_v23 = vcombine.low %v375_v15, %v387_v16 }
  0x97   :  { %v403_v11 = vpop.permute.xlu1 %402  ;;  %v391_v12 = vpop.permute.xlu0 %390 }
  0x98   :  { %v399_v13 = vrot.slane %v391_v12, %v707_v33  ;;  %v411_v14 = vrot.slane %v403_v11, %v707_v33 }
  0x9a   :  { %v512_v20 = vcombine.low %v399_v13, %v411_v14 }
  0x9b   :  { %v433_v30 = vpop.permute.xlu0 %432 }
  0xdc   :  { %v532_v39 = vpop.f32.mrb[0].mxu0 }
  0xdd   :  { %v117_v41 = vpop.f32.mrb[1].mxu0 }
  0xde   :  { %v533_v43 = vpop.f32.mrb[2].mxu0 }
  0xdf   :  { %v149_v44 = vpack.c.bf16 %v533_v43, %v532_v39  ;;  %v120_v45 = vpop.f32.mrb[3].mxu0 }
  0xe0   :  { %v148_v47 = vpack.c.bf16 %v120_v45, %v117_v41 }
  0xe1   :  { %v281_v48 = vadd.bf16 %v504_v42, %v149_v44 }
  0xe2   :  { %v280_v49 = vadd.bf16 %v503_v46, %v148_v47 }
  0xe3   :  { %v285_v60 = vmax.bf16 %v598_v6, %v281_v48 }
  0xe4   :  { %v536_v56 = vpop.f32.mrb[4].mxu0  ;;  %v284_v57 = vmax.bf16 %v598_v6, %v280_v49 }
  0xe5   :  { %v133_v58 = vpop.f32.mrb[5].mxu0 }
  0xe6   :  { %v537_v59 = vpop.f32.mrb[6].mxu0  ;;  %538 = vmatprep.subr.bf16.mxu1 %v284_v57 }
  0xe7   :  { %v151_v61 = vpack.c.bf16 %v537_v59, %v536_v56  ;;  %v136_v62 = vpop.f32.mrb[7].mxu0  ;;  %539 = vmatpush3.bf16.msra.mxu1 %v284_v57 }
  0xe8   :  { %v150_v1 = vpack.c.bf16 %v136_v62, %v133_v58  ;;  %540 = vmatprep.subr.bf16.mxu1 %v285_v60 }
  0xe9   :  { %v283_v2 = vadd.bf16 %v506_v0, %v151_v61 }
  0xea   :  { %v282_v3 = vadd.bf16 %v505_v63, %v150_v1 }
  0xeb   :  { %541 = vmatpush3.bf16.msra.mxu1 %v285_v60  ;;  %v287_v5 = vmax.bf16 %v598_v6, %v283_v2 }
  0xec   :  { %v286_v4 = vmax.bf16 %v598_v6, %v282_v3 }
  0xee   :  { %542 = vmatprep.subr.bf16.mxu1 %v286_v4 }
  0xef   :  { %543 = vmatpush3.bf16.msra.mxu1 %v286_v4 }
  0xf0   :  { %544 = vmatprep.subr.bf16.mxu1 %v287_v5 }
  0xf3   :  { %545 = vmatpush3.bf16.msra.mxu1 %v287_v5 }
  0xf6   :  { %547 = vmatmul.mubr.msk.bf16.vlgmr.msra.gmra.mrb[0].mxu1 %vm302_vm3, %v572_v7 }
 0x1c9   :  { %v548_v17 = vpop.f32.mrb[0].mxu1 }
 0x1ca   :  { %v343_v18 = vpop.f32.mrb[1].mxu1 }
 0x1cb   :  { %v549_v19 = vpop.f32.mrb[2].mxu1 }
 0x1cc   :  { %v359_v21 = vpack.c.bf16 %v549_v19, %v548_v17  ;;  %v346_v22 = vpop.f32.mrb[3].mxu1 }
 0x1cd   :  { %v358_v24 = vpack.c.bf16 %v346_v22, %v343_v18 }
 0x1ce   :  { %v425_v25 = vadd.bf16 %v512_v20, %v359_v21 }
 0x1cf   :  { %v424_v26 = vadd.bf16 %v511_v23, %v358_v24 }
 0x1d0   :  { %v427_v28 = vmax.bf16 %v598_v6, %v425_v25 }
 0x1d1   :  { %v426_v27 = vmax.bf16 %v598_v6, %v424_v26 }
 0x1d3   :  { %551 = vmatpush3.bf16.msra.mxu0 %v426_v27 }
 0x1d4   :  { %552 = vmatprep.subr.bf16.mxu0 %v600_v8 }
 0x1d7   :  { %553 = vmatpush3.bf16.msra.mxu0 %v427_v28 }
 0x1da   :  { %555 = vmatmul.mubr.msk.bf16.vlgmr.msra.gmra.mrb[8].mxu0 %vm435_vm5, %v428_v29 }
 0x2ad   :  { %v473_v31 = vpop.f32.mrb[8].mxu0 }
 0x2ae   :  { %v474_v32 = vadd.f32 %v473_v31, %v433_v30  ;;  %v556_v33 = vpop.f32.mrb[9].mxu0 }
 0x2af   :  { %v476_v34 = vpop.f32.mrb[10].mxu0 }
 0x2b0   :  { %479 = vst [vmem:[#allocation2] sm:$0x7] %v474_v32  ;;  %v557_v35 = vpop.f32.mrb[11].mxu0 }
 0x2b1   :  { %584 = shalt.err (!%p581_p4)
}
 0x2b2   :  { %s585_s17 = scalar_lea.hbm %s753_s7, 64 }
 0x2b3   :  { %p586_p5 = scmp.ne.s32.totalorder %s753_s7, %s585_s17  ;;  %p589_p6 = scmp.lt.u32.totalorder %s585_s17, %s753_s7 }
 0x2b5   :  { %p591_p7 = pnand %p589_p6, %p586_p5 }
 0x2b7   :  { %594 = shalt.err (!%p591_p7)
}
 0x2b8   :  { %489 = dma.vmem_to_hbm [thread:$0]  %s487_s14, 64, %s753_s7, [#allocation3]  }
 0x2b9   :  { %595 = dma.done.wait [#allocation3], 64  }
 0x2ba   :  { %596 = vsyncadd [#allocation3], 4294967232 }
 0x2bb   :  { %493 = vsyncpa [#allocation3], 1 }

</bundles_post_ra>
